<compile_context>
chip_gen: v6e
topology: v6e:2x2x1
jax: 0.10.0
libtpu: 0.0.40
codegen_flags: <defaults>
</compile_context>

<pallas_src>
import functools
import math

import jax
import jax.numpy as jnp
from jax.experimental import pallas as pl
from jax.experimental.pallas import tpu as pltpu

_LANE = 128                       # vreg lane width
_TILE_BYTES = 4 * 1024 * 1024     # target per-buffer tile size (~4 MiB)
_SMALL_BYTES = 512 * 1024         # below this: single block, 1-step grid
_VMEM_LIMIT = 48 * 1024 * 1024    # scoped VMEM request (fits v7x's 64 MiB)


def _cdiv(a, b):
    return -(-a // b)


def _skip_kernel_const(x_last_ref, x_first_ref, o_ref, *, a, b):
    # out = (1 - alpha) * x_last + alpha * x_first   (pure VPU elementwise)
    o_ref[...] = (b * x_last_ref[...] + a * x_first_ref[...]).astype(o_ref.dtype)


def _skip_kernel_smem(coeff_ref, x_last_ref, x_first_ref, o_ref):
    # coeff_ref is an SMEM f32[2] holding [alpha, 1 - alpha].
    a = coeff_ref[0]
    b = coeff_ref[1]
    o_ref[...] = (b * x_last_ref[...] + a * x_first_ref[...]).astype(o_ref.dtype)


def _choose_tm(rows, sublane, itemsize):
    """Rows per tile: large enough to amortize per-step cost, near-equal tiles."""
    if rows * _LANE * itemsize <= _SMALL_BYTES:
        return rows                                   # single block
    tm_max = _TILE_BYTES // (_LANE * itemsize)        # ~4 MiB tiles
    tm_max = max(sublane, (tm_max // sublane) * sublane)
    # At least 2 tiles so a "parallel" grid gives both v7x TensorCores work,
    # and split evenly to avoid a big-tile + tiny-remainder skew.
    n_tiles = max(2, _cdiv(rows, tm_max))
    tm = _cdiv(rows, n_tiles)
    tm = _cdiv(tm, sublane) * sublane                 # keep sublane alignment
    return min(tm, rows)


def _lane_dense_call(x_last2, x_first2, alpha, sublane, itemsize):
    rows = x_last2.shape[0]
    dtype = x_last2.dtype
    tm = _choose_tm(rows, sublane, itemsize)
    grid = (_cdiv(rows, tm),)
    spec = pl.BlockSpec((tm, _LANE), lambda i: (i, 0))
    out_shape = jax.ShapeDtypeStruct((rows, _LANE), dtype)
    n_elems = rows * _LANE
    cost = pl.CostEstimate(flops=3 * n_elems, transcendentals=0,
                           bytes_accessed=3 * n_elems * itemsize)
    cparams = pltpu.CompilerParams(
        dimension_semantics=("parallel",),
        vmem_limit_bytes=_VMEM_LIMIT,
    )

    # Concrete alpha (the plain nn.Module attribute case) -> bake constants.
    try:
        a = float(alpha)
        static_alpha = True
    except Exception:  # traced / learnable alpha
        static_alpha = False

    if static_alpha:
        kernel = functools.partial(_skip_kernel_const, a=a, b=1.0 - a)
        return pl.pallas_call(
            kernel,
            out_shape=out_shape,
            grid=grid,
            in_specs=[spec, spec],
            out_specs=spec,
            compiler_params=cparams,
            cost_estimate=cost,
        )(x_last2, x_first2)

    # Traced alpha: ship (alpha, 1-alpha) as a tiny SMEM operand (no recompile).
    a32 = jnp.asarray(alpha, jnp.float32)
    coeffs = jnp.stack([a32, 1.0 - a32])
    smem_spec = pl.BlockSpec(memory_space=pltpu.MemorySpace.SMEM)
    return pl.pallas_call(
        _skip_kernel_smem,
        out_shape=out_shape,
        grid=grid,
        in_specs=[smem_spec, spec, spec],
        out_specs=spec,
        compiler_params=cparams,
        cost_estimate=cost,
    )(coeffs, x_last2, x_first2)


def initial_connection(Xs, alpha=0.5):
    """Pallas implementation of InitialConnection.forward."""
    assert len(Xs) >= 1

    if len(Xs) == 1:
        return Xs[-1]                  # identity: no kernel, no HBM round trip

    x_last, x_first = Xs[-1], Xs[0]
    assert x_last.shape == x_first.shape and x_last.dtype == x_first.dtype

    orig_shape = x_last.shape
    total = math.prod(orig_shape) if orig_shape else 1
    if total == 0:
        return x_last

    itemsize = jnp.dtype(x_last.dtype).itemsize
    sublane = max(8, 32 // max(itemsize, 1))   # 8 f32 / 16 bf16 / 32 int8
    chunk = sublane * _LANE

    if total % chunk == 0:
        # Lane-dense path: flatten to (rows, 128) full-vreg slab.
        rows = total // _LANE
        out2 = _lane_dense_call(x_last.reshape(rows, _LANE),
                                x_first.reshape(rows, _LANE),
                                alpha, sublane, itemsize)
        return out2.reshape(orig_shape)

    # Pad-and-flatten fallback: keeps every load/store a full unmasked vreg and
    # keeps the pipelined grid even for awkward shapes (e.g. odd last dims).
    padded = _cdiv(total, chunk) * chunk
    pad = padded - total
    xl1 = jnp.pad(x_last.reshape(-1), (0, pad))
    xf1 = jnp.pad(x_first.reshape(-1), (0, pad))
    rows = padded // _LANE
    out2 = _lane_dense_call(xl1.reshape(rows, _LANE),
                            xf1.reshape(rows, _LANE),
                            alpha, sublane, itemsize)
    return out2.reshape(-1)[:total].reshape(orig_shape)


if __name__ == "__main__":
    key = jax.random.PRNGKey(0)
    ks = jax.random.split(key, 12)
    alpha = 0.5

    # Case 1: small NCHW input (lane-dense, single-block 1-step grid).
    shape = (2, 4, 16, 16)
    x0 = jax.random.normal(ks[0], shape, dtype=jnp.float32)   # Xs[0]
    x1 = jax.random.normal(ks[1], shape, dtype=jnp.float32)   # intermediate
    x2 = jax.random.normal(ks[2], shape, dtype=jnp.float32)   # Xs[-1]
    out = jax.block_until_ready(initial_connection([x0, x1, x2], alpha=alpha))
    ref = (1.0 - alpha) * x2 + alpha * x0
    assert out.shape == shape
    assert jnp.allclose(out, ref, atol=1e-6, rtol=1e-6)

    # Case 2: larger tensor -> balanced multi-tile parallel grid (2 x 8192 rows).
    big_shape = (8, 64, 32, 128)
    y0 = jax.random.normal(ks[3], big_shape, dtype=jnp.float32)
    y1 = jax.random.normal(ks[4], big_shape, dtype=jnp.float32)
    out_big = jax.block_until_ready(initial_connection([y0, y1], alpha=alpha))
    ref_big = (1.0 - alpha) * y1 + alpha * y0
    assert jnp.allclose(out_big, ref_big, atol=1e-6, rtol=1e-6)

    # Case 3: odd row count -> balanced (1032, 1024)-row tiles, not (2048, 8).
    odd_shape = (2056, 128)
    z0 = jax.random.normal(ks[5], odd_shape, dtype=jnp.float32)
    z1 = jax.random.normal(ks[6], odd_shape, dtype=jnp.float32)
    out_odd = jax.block_until_ready(initial_connection([z0, z1], alpha=alpha))
    ref_odd = (1.0 - alpha) * z1 + alpha * z0
    assert jnp.allclose(out_odd, ref_odd, atol=1e-6, rtol=1e-6)

    # Case 4: element count not a multiple of 128 -> pad-and-flatten path.
    frag_shape = (3, 5, 7)
    w0 = jax.random.normal(ks[7], frag_shape, dtype=jnp.float32)
    w1 = jax.random.normal(ks[8], frag_shape, dtype=jnp.float32)
    out_frag = jax.block_until_ready(initial_connection([w0, w1], alpha=alpha))
    ref_frag = (1.0 - alpha) * w1 + alpha * w0
    assert out_frag.shape == frag_shape
    assert jnp.allclose(out_frag, ref_frag, atol=1e-6, rtol=1e-6)

    # Case 5: bf16 input -> dtype-aware (16-row) sublane alignment.
    bf_shape = (4, 8, 16, 32)
    b0 = jax.random.normal(ks[9], bf_shape, dtype=jnp.bfloat16)
    b1 = jax.random.normal(ks[10], bf_shape, dtype=jnp.bfloat16)
    out_bf = jax.block_until_ready(initial_connection([b0, b1], alpha=alpha))
    ref_bf = (1.0 - alpha) * b1 + alpha * b0
    assert out_bf.dtype == jnp.bfloat16
    assert jnp.allclose(out_bf.astype(jnp.float32), ref_bf.astype(jnp.float32),
                        atol=2e-2, rtol=2e-2)

    # Case 6: traced alpha under jit -> SMEM-scalar path (no recompile per value).
    traced_fn = jax.jit(lambda a, u, v: initial_connection([u, v], alpha=a))
    out_tr = jax.block_until_ready(traced_fn(jnp.float32(0.25), x0, x2))
    ref_tr = (1.0 - 0.25) * x2 + 0.25 * x0
    assert jnp.allclose(out_tr, ref_tr, atol=1e-6, rtol=1e-6)

    # Case 7: single input -> identity (plain return, no kernel).
    out1 = jax.block_until_ready(initial_connection([x0], alpha=alpha))
    assert jnp.allclose(out1, x0)

    print("KERNEL_OK")
</pallas_src>

<mosaic_0001>
module attributes {stable_mosaic.version = 11 : i64} {
  func.func @_skip_kernel_const(%arg0: i32, %arg1: memref<16x128xf32, #tpu.memory_space<vmem>>, %arg2: memref<16x128xf32, #tpu.memory_space<vmem>>, %arg3: memref<16x128xf32, #tpu.memory_space<vmem>>) attributes {dimension_semantics = [#tpu.dimension_semantics<parallel>], iteration_bounds = array<i64: 1>, scalar_prefetch = 0 : i64, scratch_operands = 0 : i64, tpu.core_type = #tpu.core_type<tc>, window_params = [{transform_indices = @transform_0, window_bounds = array<i64: 16, 128>}, {transform_indices = @transform_1, window_bounds = array<i64: 16, 128>}, {transform_indices = @transform_2, window_bounds = array<i64: 16, 128>}]} {
    %c0 = arith.constant 0 : index
    %c0_0 = arith.constant 0 : index
    %0 = vector.load %arg1[%c0, %c0_0] : memref<16x128xf32, #tpu.memory_space<vmem>>, vector<16x128xf32>
    %cst = arith.constant 5.000000e-01 : f32
    %1 = vector.broadcast %cst : f32 to vector<16x128xf32>
    %2 = arith.mulf %1, %0 : vector<16x128xf32>
    %c0_1 = arith.constant 0 : index
    %c0_2 = arith.constant 0 : index
    %3 = vector.load %arg2[%c0_1, %c0_2] : memref<16x128xf32, #tpu.memory_space<vmem>>, vector<16x128xf32>
    %cst_3 = arith.constant 5.000000e-01 : f32
    %4 = vector.broadcast %cst_3 : f32 to vector<16x128xf32>
    %5 = arith.mulf %4, %3 : vector<16x128xf32>
    %6 = arith.addf %2, %5 : vector<16x128xf32>
    %c0_4 = arith.constant 0 : index
    %c0_5 = arith.constant 0 : index
    %7 = vector.load %arg3[%c0_4, %c0_5] : memref<16x128xf32, #tpu.memory_space<vmem>>, vector<16x128xf32>
    tpu.vector_store %arg3[%c0_4, %c0_5], %6 {strides = array<i32>} : memref<16x128xf32, #tpu.memory_space<vmem>>, vector<16x128xf32>,
    return
  }
  func.func @transform_0(%arg0: i32) -> (i32, i32) {
    %c0_i32 = arith.constant 0 : i32
    %c0_i32_0 = arith.constant 0 : i32
    return %arg0, %c0_i32 : i32, i32
  }
  func.func @transform_1(%arg0: i32) -> (i32, i32) {
    %c0_i32 = arith.constant 0 : i32
    %c0_i32_0 = arith.constant 0 : i32
    return %arg0, %c0_i32 : i32, i32
  }
  func.func @transform_2(%arg0: i32) -> (i32, i32) {
    %c0_i32 = arith.constant 0 : i32
    %c0_i32_0 = arith.constant 0 : i32
    return %arg0, %c0_i32 : i32, i32
  }
}

</mosaic_0001>

<bundles_post_ra>
// kernel: tpu_custom_call.1
= control target key start
LH: loop header
LB: loop body
LE: loop exit
PB: predicated region body
PF: predicated region fallthrough
CT: control target
= control target key end

     0   :  { %7 = vsyncpa [#allocation3], 0  ;;  %s179_s0 = inlined_call_operand.hbm [shape: f32[16,128], index: 0, kind: input, shape index: {}]   ;;  %s180_s1 = inlined_call_operand.hbm [shape: f32[16,128], index: 1, kind: input, shape index: {}]   ;;  %s181_s2 = inlined_call_operand.hbm [shape: f32[16,128], index: 2, kind: output, shape index: {}]  }
   0x1   :  { %8 = vsyncpa [#allocation6], 0 }
   0x2   :  { %9 = vsyncpa [#allocation4], 0  ;;  %s141_s9 = smov [#allocation2]  }
   0x3   :  { %s15_s10 = sshll.u32 %s141_s9, 4  ;;  %s16_s10 = int_to_ptr.vmem [resolvable:$true] %s15_s10 }
   0x4   :  { %s83_s11 = scalar_lea.vmem %s16_s10, 256  ;;  %p88_p1 = scmp.lt.s32.totalorder %s16_s10, %s16_s10 }
   0x5   :  { %p84_p0 = scmp.ne.s32.totalorder %s16_s10, %s83_s11  ;;  %p89_p2 = scmp.lt.s32.totalorder %s83_s11, %s83_s11 }
   0x7   :  { %p90_p3 = por %p89_p2, %p88_p1 }
   0x9   :  { %p91_p4 = pnand %p90_p3, %p84_p0 }
   0xb   :  { %94 = shalt.err (!%p91_p4)
}
   0xc   :  { %s142_s12 = smov 128   ;;  %s143_s13 = smov 8  }
   0xd   :  { %21 = dma.hbm_to_vmem [thread:$0]  %s179_s0, 256, %s16_s10, [#allocation3], %s142_s12, %s142_s12, %s143_s13  }
   0xe   :  { %s144_s16 = smov [#allocation5]  }
   0xf   :  { %s27_s17 = sshll.u32 %s144_s16, 4  ;;  %s28_s17 = int_to_ptr.vmem [resolvable:$true] %s27_s17 }
  0x10   :  { %s103_s18 = scalar_lea.vmem %s28_s17, 256  ;;  %p108_p6 = scmp.lt.s32.totalorder %s28_s17, %s28_s17 }
  0x11   :  { %p104_p5 = scmp.ne.s32.totalorder %s28_s17, %s103_s18  ;;  %p109_p7 = scmp.lt.s32.totalorder %s103_s18, %s103_s18 }
  0x13   :  { %p110_p8 = por %p109_p7, %p108_p6 }
  0x15   :  { %p111_p9 = pnand %p110_p8, %p104_p5 }
  0x17   :  { %114 = shalt.err (!%p111_p9)
}
  0x18   :  { %33 = dma.hbm_to_vmem [thread:$0]  %s180_s1, 256, %s28_s17, [#allocation6], %s142_s12, %s142_s12, %s143_s13  }
  0x19   :  { %135 = dma.done.wait [#allocation3], 256  }
  0x1a   :  { %136 = vsyncadd [#allocation3], 4294967040 }
  0x1b   :  { %137 = dma.done.wait [#allocation6], 256  }
  0x1c   :  { %138 = vsyncadd [#allocation6], 4294967040  ;;  %v40_v0 = vld [vmem:[#allocation2] sm:$0xff]  ;;  %v44_v1 = vld [vmem:[#allocation5] sm:$0xff]  ;;  %s145_s0 = smov [#allocation7]  }
  0x1d   :  { %v41_v2 = vld [vmem:[#allocation2 + $0x8] sm:$0xff]  ;;  %v42_v3 = vmul.f32 0.5, %v40_v0  ;;  %v46_v4 = vmul.f32 0.5, %v44_v1  ;;  %v45_v6 = vld [vmem:[#allocation5 + $0x8] sm:$0xff]  ;;  %s57_s21 = sshll.u32 %s145_s0, 4  ;;  %s58_s21 = int_to_ptr.vmem [resolvable:$true] %s57_s21 }
  0x1e   :  { %v43_v5 = vmul.f32 0.5, %v41_v2  ;;  %v47_v7 = vmul.f32 0.5, %v45_v6  ;;  %s115_s1 = scalar_lea.vmem %s58_s21, 256  ;;  %p120_p11 = scmp.lt.s32.totalorder %s58_s21, %s58_s21 }
  0x1f   :  { %v48_v8 = vadd.f32 %v46_v4, %v42_v3  ;;  %p116_p10 = scmp.ne.s32.totalorder %s58_s21, %s115_s1  ;;  %p121_p12 = scmp.lt.s32.totalorder %s115_s1, %s115_s1 }
  0x20   :  { %v49_v9 = vadd.f32 %v47_v7, %v43_v5 }
  0x21   :  { %50 = vst [vmem:[#allocation7] sm:$0xff] %v48_v8  ;;  %p122_p13 = por %p121_p12, %p120_p11 }
  0x22   :  { %51 = vst [vmem:[#allocation7 + $0x8] sm:$0xff] %v49_v9 }
  0x23   :  { %p123_p0 = pnand %p122_p13, %p116_p10 }
  0x25   :  { %126 = shalt.err (!%p123_p0)
}
  0x26   :  { %63 = dma.vmem_to_hbm [thread:$0]  %s58_s21, 256, %s181_s2, [#allocation4], %s142_s12, %s142_s12, %s143_s13  }
  0x27   :  { %139 = dma.done.wait [#allocation4], 256  }
  0x28   :  { %140 = vsyncadd [#allocation4], 4294967040 }
  0x29   :  { %67 = vsyncpa [#allocation3], 1 }
  0x2a   :  { %68 = vsyncpa [#allocation6], 1 }
  0x2b   :  { %69 = vsyncpa [#allocation4], 1 }

</bundles_post_ra>
